<compile_context>
chip_gen: v7x
topology: tpu7x:2x2x1
jax: 0.10.0
libtpu: 0.0.40
codegen_flags: <defaults>
</compile_context>

<pallas_src>
import functools

import jax
import jax.numpy as jnp
from jax import lax
from jax.experimental import pallas as pl
from jax.experimental.pallas import tpu as pltpu


# Packed-sublane multiple per dtype byte width (f32 -> 8, bf16 -> 16, int8/fp8 -> 32).
_SUBLANE = {1: 32, 2: 16, 4: 8}


def _round_up(x, m):
    return ((x + m - 1) // m) * m


def _vmem_capacity_bytes():
    """Generation-aware VMEM capacity (128 MiB v5e/v6e, 64 MiB per TC on v7x)."""
    try:
        cap = int(getattr(pltpu.get_tpu_info(), "vmem_capacity_bytes", 0))
        if cap > 0:
            return cap
    except Exception:
        pass
    return 64 << 20  # conservative default (v7x per-TensorCore)


def _vmem_limit_bytes(needed, vmem_cap):
    """Explicit scoped-VMEM limit: needed + headroom, capped for v7x safety."""
    lim = max(16 << 20, int(needed * 1.5) + (2 << 20))
    lim = min(lim, 32 << 20, vmem_cap // 2)
    return max(lim, needed + (1 << 20))


# ----------------------------------------------------------------------------
# Main path: full-D row blocks.
# ----------------------------------------------------------------------------
def _row_ln_kernel(x_ref, o_ref):
    # Block: (tile_rows, D). Two-pass (x - mean) variance for stability.
    x = x_ref[...].astype(jnp.float32)
    n = x.shape[-1]
    mean = jnp.mean(x, axis=-1, keepdims=True)
    diff = x - mean
    # torch.std default: unbiased (Bessel's correction, divide by N-1).
    var = jnp.sum(diff * diff, axis=-1, keepdims=True) * jnp.float32(1.0 / (n - 1))
    o_ref[...] = (diff * lax.rsqrt(var)).astype(o_ref.dtype)   # rsqrt -> EUP


def _choose_row_tile(R, D, dtype_bytes, budget):
    """Row tile for the full-D path, or None if it cannot fit the budget."""
    sub = _SUBLANE.get(dtype_bytes, 8)
    # Per row: 2 input + 2 output double-buffers (dtype) + ~2 full-tile f32
    # intermediates (upcast x, diff) the body keeps live.
    per_row = (4 * dtype_bytes + 2 * 4) * D
    max_rows = (budget // per_row) // sub * sub
    if max_rows < sub:
        return None  # even a minimal row tile blows the budget -> D-tiled path
    # ~2 MiB per I/O block already saturates HBM bandwidth; bigger buys nothing.
    cap_rows = max(sub, ((2 << 20) // (D * dtype_bytes)) // sub * sub)
    max_rows = min(max_rows, cap_rows)
    # Aim for >= 8 roughly equal steps (>= 4 per TensorCore on v7x megacore).
    n_min_blocks = -(-R // sub)
    desired_steps = min(8, n_min_blocks)
    tile = _round_up(-(-R // desired_steps), sub)
    tile = max(sub, min(tile, max_rows))
    if tile >= R:
        tile = R  # full-extent block: always legal, regardless of alignment
    return tile


# ----------------------------------------------------------------------------
# Fallback path: very long rows -> tile D as well (two passes over the data).
# ----------------------------------------------------------------------------
def _dtiled_ln_kernel(x_ref, o_ref, sum_ref, ssq_ref, *, full_d, n_d_blocks, tile_d):
    k = pl.program_id(1)

    @pl.when(k == 0)
    def _init():
        sum_ref[...] = jnp.zeros_like(sum_ref)
        ssq_ref[...] = jnp.zeros_like(ssq_ref)

    x = x_ref[...].astype(jnp.float32)

    @pl.when(k < n_d_blocks)
    def _accumulate():
        # Mask out-of-range columns of the ragged last D block (garbage reads).
        col = lax.broadcasted_iota(jnp.int32, x.shape, 1) + k * tile_d
        xv = jnp.where(col < full_d, x, jnp.float32(0.0))
        sum_ref[...] += jnp.sum(xv, axis=-1, keepdims=True)
        ssq_ref[...] += jnp.sum(xv * xv, axis=-1, keepdims=True)

    @pl.when(k == n_d_blocks)
    def _finalize_stats():
        n = jnp.float32(full_d)
        mean = sum_ref[...] * (1.0 / n)
        var = (ssq_ref[...] - n * mean * mean) * jnp.float32(1.0 / (full_d - 1))
        var = jnp.maximum(var, 0.0)       # guard f32 cancellation
        sum_ref[...] = mean               # reuse scratch: mean
        ssq_ref[...] = lax.rsqrt(var)     # reuse scratch: 1/std (EUP)

    @pl.when(k >= n_d_blocks)
    def _normalize():
        o_ref[...] = ((x - sum_ref[...]) * ssq_ref[...]).astype(o_ref.dtype)


def _choose_d_tiles(R, D, dtype_bytes, budget):
    sub = _SUBLANE.get(dtype_bytes, 8)
    tile_rows = min(256, R)
    if tile_rows < R:
        tile_rows = max(sub, (tile_rows // sub) * sub)
    per_elem = 4 * dtype_bytes + 2 * 4   # I/O double-buffers + f32 temps
    max_d = budget // (tile_rows * per_elem)
    tile_d = max(128, (max_d // 128) * 128)
    if tile_d >= D:
        tile_d = D                        # full-extent block: always legal
    return tile_rows, tile_d


# ----------------------------------------------------------------------------
# Wrapper
# ----------------------------------------------------------------------------
def layer_norm_pallas(x, *, force_d_tiling=False, _tile_rows=None, _tile_d=None):
    """Pallas implementation of the segan LayerNorm forward."""
    orig_shape = x.shape
    x2d = x.reshape(-1, x.shape[-1]) if x.ndim == 3 else x
    R, D = x2d.shape
    if D < 2:
        raise ValueError(
            "LayerNorm (segan) needs last-dim >= 2: torch.std's unbiased "
            "estimator divides by N-1.")
    dtype_bytes = jnp.dtype(x2d.dtype).itemsize

    vmem_cap = _vmem_capacity_bytes()
    budget = min(vmem_cap // 4, 12 << 20)

    tile_rows = None if force_d_tiling else _choose_row_tile(R, D, dtype_bytes, budget)

    if tile_rows is not None:
        # ---- full-D row-tiled path ----
        needed = (4 * dtype_bytes + 2 * 4) * tile_rows * D
        out = pl.pallas_call(
            _row_ln_kernel,
            out_shape=jax.ShapeDtypeStruct((R, D), x2d.dtype),
            grid_spec=pltpu.PrefetchScalarGridSpec(
                num_scalar_prefetch=0,
                grid=(pl.cdiv(R, tile_rows),),
                in_specs=[pl.BlockSpec((tile_rows, D), lambda i: (i, 0))],
                out_specs=pl.BlockSpec((tile_rows, D), lambda i: (i, 0)),
            ),
            compiler_params=pltpu.CompilerParams(
                dimension_semantics=("parallel",),
                vmem_limit_bytes=_vmem_limit_bytes(needed, vmem_cap),
            ),
            cost_estimate=pl.CostEstimate(
                flops=5 * R * D,
                transcendentals=R,
                bytes_accessed=2 * R * D * dtype_bytes,
            ),
        )(x2d)
    else:
        # ---- D-tiled fallback (very long rows) ----
        tile_rows, tile_d = _choose_d_tiles(R, D, dtype_bytes, budget)
        if _tile_rows is not None:
            tile_rows = min(_tile_rows, R)
        if _tile_d is not None:
            tile_d = min(_tile_d, D)
        nd = -(-D // tile_d)
        needed = (4 * dtype_bytes + 2 * 4) * tile_rows * tile_d

        kernel = functools.partial(
            _dtiled_ln_kernel, full_d=D, n_d_blocks=nd, tile_d=tile_d)

        out = pl.pallas_call(
            kernel,
            out_shape=jax.ShapeDtypeStruct((R, D), x2d.dtype),
            grid_spec=pltpu.PrefetchScalarGridSpec(
                num_scalar_prefetch=0,
                grid=(pl.cdiv(R, tile_rows), 2 * nd),
                in_specs=[pl.BlockSpec(
                    (tile_rows, tile_d),
                    lambda i, k, nd=nd: (i, jnp.where(k < nd, k, k - nd)))],
                out_specs=pl.BlockSpec(
                    (tile_rows, tile_d),
                    lambda i, k, nd=nd: (i, jnp.maximum(k - nd, 0))),
                scratch_shapes=[pltpu.VMEM((tile_rows, 1), jnp.float32),
                                pltpu.VMEM((tile_rows, 1), jnp.float32)],
            ),
            compiler_params=pltpu.CompilerParams(
                dimension_semantics=("parallel", "arbitrary"),
                vmem_limit_bytes=_vmem_limit_bytes(needed, vmem_cap),
            ),
            cost_estimate=pl.CostEstimate(
                flops=7 * R * D,
                transcendentals=R,
                bytes_accessed=3 * R * D * dtype_bytes,  # x read twice + write
            ),
        )(x2d)

    if x.ndim == 3:
        out = out.reshape(orig_shape)
    return out


def _reference(x):
    orig_shape = x.shape
    if x.ndim == 3:
        x = x.reshape(-1, x.shape[-1])
    mean = jnp.mean(x, axis=1, keepdims=True)
    n = x.shape[1]
    std = jnp.sqrt(jnp.sum((x - mean) ** 2, axis=1, keepdims=True) / (n - 1))
    out = (x - mean) / std
    return out.reshape(orig_shape)


if __name__ == "__main__":
    key = jax.random.PRNGKey(0)
    k1, k2 = jax.random.split(key)

    # segan LayerNorm sees NCL (1-D conv) activations: (batch=2, channels=4, seq=16)
    x3d = jax.random.normal(k1, (2, 4, 16), dtype=jnp.float32)
    y = layer_norm_pallas(x3d)
    jax.block_until_ready(y)
    assert jnp.allclose(y, _reference(x3d), atol=1e-5, rtol=1e-5), \
        "main-path mismatch vs reference"

    # Exercise the long-row (D-tiled) fallback at a small forced shape so both
    # code paths are compiled and checked (ragged rows + ragged D blocks).
    x2d = jax.random.normal(k2, (20, 400), dtype=jnp.float32)
    y2 = layer_norm_pallas(x2d, force_d_tiling=True, _tile_rows=8, _tile_d=128)
    jax.block_until_ready(y2)
    assert jnp.allclose(y2, _reference(x2d), atol=1e-4, rtol=1e-4), \
        "D-tiled fallback mismatch vs reference"

    print("KERNEL_OK")
</pallas_src>

<mosaic_0001>
module attributes {stable_mosaic.version = 11 : i64} {
  func.func @_row_ln_kernel(%arg0: i32, %arg1: memref<8x16xf32, #tpu.memory_space<vmem>>, %arg2: memref<8x16xf32, #tpu.memory_space<vmem>>) attributes {dimension_semantics = [#tpu.dimension_semantics<parallel>], iteration_bounds = array<i64: 1>, scalar_prefetch = 0 : i64, scratch_operands = 0 : i64, tpu.core_type = #tpu.core_type<tc>, window_params = [{transform_indices = @transform_0, window_bounds = array<i64: 8, 16>}, {transform_indices = @transform_1, window_bounds = array<i64: 8, 16>}]} {
    %c0 = arith.constant 0 : index
    %c0_0 = arith.constant 0 : index
    %0 = vector.load %arg1[%c0, %c0_0] : memref<8x16xf32, #tpu.memory_space<vmem>>, vector<8x16xf32>
    %cst = arith.constant dense<0.000000e+00> : vector<8xf32>
    %1 = vector.multi_reduction <add>, %0, %cst [1] : vector<8x16xf32> to vector<8xf32>
    %2 = vector.shape_cast %1 : vector<8xf32> to vector<8x1xf32>
    %cst_1 = arith.constant 1.600000e+01 : f32
    %3 = vector.broadcast %cst_1 : f32 to vector<8x1xf32>
    %4 = arith.divf %2, %3 : vector<8x1xf32>
    %5 = vector.broadcast %4 : vector<8x1xf32> to vector<8x16xf32>
    %6 = arith.subf %0, %5 : vector<8x16xf32>
    %7 = arith.mulf %6, %6 : vector<8x16xf32>
    %cst_2 = arith.constant dense<0.000000e+00> : vector<8xf32>
    %8 = vector.multi_reduction <add>, %7, %cst_2 [1] : vector<8x16xf32> to vector<8xf32>
    %9 = vector.shape_cast %8 : vector<8xf32> to vector<8x1xf32>
    %cst_3 = arith.constant 0.0666666701 : f32
    %10 = vector.broadcast %cst_3 : f32 to vector<8x1xf32>
    %11 = arith.mulf %9, %10 : vector<8x1xf32>
    %12 = math.rsqrt %11 : vector<8x1xf32>
    %13 = vector.broadcast %12 : vector<8x1xf32> to vector<8x16xf32>
    %14 = arith.mulf %6, %13 : vector<8x16xf32>
    %c0_4 = arith.constant 0 : index
    %c0_5 = arith.constant 0 : index
    %15 = vector.load %arg2[%c0_4, %c0_5] : memref<8x16xf32, #tpu.memory_space<vmem>>, vector<8x16xf32>
    tpu.vector_store %arg2[%c0_4, %c0_5], %14 {strides = array<i32>} : memref<8x16xf32, #tpu.memory_space<vmem>>, vector<8x16xf32>,
    return
  }
  func.func @transform_0(%arg0: i32) -> (i32, i32) {
    %c0_i32 = arith.constant 0 : i32
    %c0_i32_0 = arith.constant 0 : i32
    return %arg0, %c0_i32 : i32, i32
  }
  func.func @transform_1(%arg0: i32) -> (i32, i32) {
    %c0_i32 = arith.constant 0 : i32
    %c0_i32_0 = arith.constant 0 : i32
    return %arg0, %c0_i32 : i32, i32
  }
}

</mosaic_0001>

<bundles_post_ra>
// kernel: tpu_custom_call.1
= control target key start
LH: loop header
LB: loop body
LE: loop exit
PB: predicated region body
PF: predicated region fallthrough
CT: control target
= control target key end

     0   :  { %6 = vsyncpa [#allocation3], 0  ;;  %s143_s0 = inlined_call_operand.hbm [shape: f32[8,16], index: 0, kind: input, shape index: {}]   ;;  %s144_s1 = inlined_call_operand.hbm [shape: f32[8,16], index: 1, kind: output, shape index: {}]  }
   0x1   :  { %7 = vsyncpa [#allocation4], 0  ;;  %s104_s6 = smov [#allocation2]   ;;  %s56_s10 = scalar_lea.hbm %s143_s0, 128 }
   0x2   :  { %s14_s7 = sshll.u32 %s104_s6, 4  ;;  %p57_p0 = scmp.ne.s32.totalorder %s143_s0, %s56_s10  ;;  %s15_s7 = int_to_ptr.vmem [resolvable:$true] %s14_s7 }
   0x3   :  { %p60_p1 = scmp.lt.u32.totalorder %s56_s10, %s143_s0 }
   0x5   :  { %p62_p2 = pnand %p60_p1, %p57_p0 }
   0x7   :  { %65 = shalt.err (!%p62_p2)
}
   0x8   :  { %s66_s15 = scalar_lea.vmem %s15_s7, 128  ;;  %p71_p4 = scmp.lt.s32.totalorder %s15_s7, %s15_s7 }
   0x9   :  { %p67_p3 = scmp.ne.s32.totalorder %s15_s7, %s66_s15  ;;  %p72_p5 = scmp.lt.s32.totalorder %s66_s15, %s66_s15 }
   0xb   :  { %p73_p6 = por %p72_p5, %p71_p4 }
   0xd   :  { %p74_p7 = pnand %p73_p6, %p67_p3 }
   0xf   :  { %77 = shalt.err (!%p74_p7)
}
  0x10   :  { %17 = dma.hbm_to_vmem [thread:$0]  %s143_s0, 128, %s15_s7, [#allocation3]  }
  0x11   :  { %100 = dma.done.wait [#allocation3], 128  }
  0x12   :  { %101 = vsyncadd [#allocation3], 4294967168  ;;  %vm22_vm0 = vcmask 130048   ;;  %v21_v0 = vld [vmem:[#allocation2] sm:$0xff]  ;;  %s105_s18 = smov [#allocation5]  }
  0x13   :  { %v23_v1 = vsel %vm22_vm0, %v21_v0, 0.0  ;;  %s43_s19 = sshll.u32 %s105_s18, 4  ;;  %s44_s19 = int_to_ptr.vmem [resolvable:$true] %s43_s19 }
  0x14   :  { %24 = vadd.xlane.f32.xlu0 %v23_v1  ;;  %s78_s0 = scalar_lea.vmem %s44_s19, 128  ;;  %p83_p9 = scmp.lt.s32.totalorder %s44_s19, %s44_s19 }
  0x15   :  { %p79_p8 = scmp.ne.s32.totalorder %s44_s19, %s78_s0  ;;  %p84_p10 = scmp.lt.s32.totalorder %s78_s0, %s78_s0 }
  0x17   :  { %p85_p11 = por %p84_p10, %p83_p9 }
  0x19   :  { %p86_p12 = pnand %p85_p11, %p79_p8 }
  0xa1   :  { %v25_v2 = vpop.xlane.xlu0 %24 }
  0xa2   :  { %v27_v3 = vmul.f32 0.0625, %v25_v2 }
  0xa4   :  { %v28_v4 = vsub.f32 %v21_v0, %v27_v3 }
  0xa6   :  { %v29_v5 = vmul.f32 %v28_v4, %v28_v4 }
  0xa8   :  { %v30_v6 = vsel %vm22_vm0, %v29_v5, 0.0 }
  0xa9   :  { %31 = vadd.xlane.f32.xlu0 %v30_v6 }
 0x136   :  { %v32_v7 = vpop.xlane.xlu0 %31 }
 0x137   :  { %v33_v8 = vmul.f32 0.06666667, %v32_v7 }
 0x139   :  { %54 = vrsqrt.f32 %v33_v8 }
 0x143   :  { %v55_v9 = vpop.eup %54 }
 0x144   :  { %v35_v10 = vmul.f32 %v55_v9, %v28_v4 }
 0x146   :  { %36 = vst.msk [vmem:[#allocation5] sm:$0xff] %vm22_vm0, %v35_v10 }
 0x147   :  { %89 = shalt.err (!%p86_p12)
}
 0x148   :  { %s90_s22 = scalar_lea.hbm %s144_s1, 128 }
 0x149   :  { %p91_p13 = scmp.ne.s32.totalorder %s144_s1, %s90_s22  ;;  %p94_p0 = scmp.lt.u32.totalorder %s90_s22, %s144_s1 }
 0x14b   :  { %p96_p1 = pnand %p94_p0, %p91_p13 }
 0x14d   :  { %99 = shalt.err (!%p96_p1)
}
 0x14e   :  { %46 = dma.vmem_to_hbm [thread:$0]  %s44_s19, 128, %s144_s1, [#allocation4]  }
 0x14f   :  { %102 = dma.done.wait [#allocation4], 128  }
 0x150   :  { %103 = vsyncadd [#allocation4], 4294967168 }
 0x151   :  { %50 = vsyncpa [#allocation3], 1 }
 0x152   :  { %51 = vsyncpa [#allocation4], 1 }

</bundles_post_ra>
